<compile_context>
chip_gen: v6e
topology: v6e:2x2x1
jax: 0.10.0
libtpu: 0.0.40
codegen_flags: <defaults>
</compile_context>

<pallas_src>
import functools

import jax
import jax.numpy as jnp
from jax.experimental import pallas as pl
from jax.experimental.pallas import tpu as pltpu

_EPS = 1e-5


def _shift_lanes(x, shift, hw):
    """Cyclic shift along the last (lane) axis: result[:, p] = x[:, (p - shift) % hw]."""
    if shift == 0:
        return x
    return jnp.concatenate([x[:, hw - shift:], x[:, :hw - shift]], axis=1)


def basic_block_kernel(x_ref, w1_ref, w2_ref, b1_ref, b2_ref, m_ref, o_ref,
                       *, HW, W):
    x = x_ref[0]                      # (C, HW) bf16, lane-dense
    masks = m_ref[...]                # (9, 1, HW) bf16 boundary masks

    def im2col(act):
        """(C, HW) -> (9C, HW) column matrix, tap-major (kh, kw, cin)."""
        cols = []
        for kh in range(3):
            for kw in range(3):
                d = (kh - 1) * W + (kw - 1)          # flat source offset
                if d == 0:
                    cols.append(act)                  # center tap: all valid
                else:
                    shifted = _shift_lanes(act, (-d) % HW, HW)
                    cols.append(shifted * masks[kh * 3 + kw])
        return jnp.concatenate(cols, axis=0)

    # conv1 (3x3, s=1, p=1) with BN1 scale folded into weights -> bias -> ReLU
    h1 = jnp.dot(w1_ref[...], im2col(x), preferred_element_type=jnp.float32)
    h1 = jnp.maximum(h1 + b1_ref[...], 0.0)

    # conv2 (3x3, s=1, p=1) with BN2 scale folded into weights -> bias
    h2 = jnp.dot(w2_ref[...], im2col(h1.astype(jnp.bfloat16)),
                 preferred_element_type=jnp.float32)
    h2 = h2 + b2_ref[...]

    # identity residual (downsample is None) + final ReLU; lane-dense f32 store.
    o_ref[0] = jnp.maximum(h2 + x.astype(jnp.float32), 0.0)


def _fold_bn_into_conv(w_oihw, bn, C):
    """Fold frozen-BN scale into the im2col weight; return (Cout, 9*Cin) bf16 + bias."""
    scale = bn["weight"] / jnp.sqrt(bn["running_var"] + _EPS)         # (C,)
    bias = (bn["bias"] - bn["running_mean"] * scale).astype(jnp.float32)
    w = jnp.transpose(w_oihw, (0, 2, 3, 1)).reshape(C, 9 * C)         # (Cout, kh kw cin)
    w = (w * scale[:, None]).astype(jnp.bfloat16)
    return w, bias.reshape(C, 1)


def _make_boundary_masks(H, W):
    """(9, 1, H*W) bf16: 1 where the 3x3 tap source is inside the image."""
    HW = H * W
    h_idx = jnp.arange(HW, dtype=jnp.int32) // W
    w_idx = jnp.arange(HW, dtype=jnp.int32) % W
    rows = []
    for kh in range(3):
        for kw in range(3):
            ok_h = (h_idx + (kh - 1) >= 0) & (h_idx + (kh - 1) < H)
            ok_w = (w_idx + (kw - 1) >= 0) & (w_idx + (kw - 1) < W)
            rows.append(ok_h & ok_w)
    return jnp.stack(rows).astype(jnp.bfloat16).reshape(9, 1, HW)


def basic_block_pallas(x_nchw, w1_oihw, w2_oihw, bn1, bn2):
    N, C, H, W = x_nchw.shape
    HW = H * W

    # NCHW -> (N, C, H*W): pure reshape of contiguous memory, no transpose.
    x = x_nchw.reshape(N, C, HW).astype(jnp.bfloat16)
    w1, b1 = _fold_bn_into_conv(w1_oihw, bn1, C)
    w2, b2 = _fold_bn_into_conv(w2_oihw, bn2, C)
    masks = _make_boundary_masks(H, W)

    kernel = functools.partial(basic_block_kernel, HW=HW, W=W)

    flops = N * 2 * (2 * 9 * C * C * HW)                    # two 3x3 convs
    bytes_accessed = (x.size * 2 + N * C * HW * 4           # activations in/out
                      + (w1.size + w2.size) * 2             # folded bf16 weights
                      + masks.size * 2 + 2 * C * 4)         # masks + biases

    out = pl.pallas_call(
        kernel,
        out_shape=jax.ShapeDtypeStruct((N, C, HW), jnp.float32),
        grid_spec=pltpu.PrefetchScalarGridSpec(
            num_scalar_prefetch=0,
            grid=(N,),
            in_specs=[
                pl.BlockSpec((1, C, HW), lambda n: (n, 0, 0)),    # x (per image)
                pl.BlockSpec((C, 9 * C), lambda n: (0, 0)),       # w1 (resident)
                pl.BlockSpec((C, 9 * C), lambda n: (0, 0)),       # w2 (resident)
                pl.BlockSpec((C, 1), lambda n: (0, 0)),           # bn1 bias
                pl.BlockSpec((C, 1), lambda n: (0, 0)),           # bn2 bias
                pl.BlockSpec((9, 1, HW), lambda n: (0, 0, 0)),    # boundary masks
            ],
            out_specs=pl.BlockSpec((1, C, HW), lambda n: (n, 0, 0)),
        ),
        compiler_params=pltpu.CompilerParams(
            dimension_semantics=("parallel",),     # 2 TCs on v7x; no-op v5e/v6e
            vmem_limit_bytes=32 * 1024 * 1024,
        ),
        cost_estimate=pl.CostEstimate(flops=flops, transcendentals=0,
                                      bytes_accessed=bytes_accessed),
    )(x, w1, w2, b1, b2, masks)

    return out.reshape(N, C, H, W)                           # back to NCHW (free)


def basic_block_reference(x_nchw, w1_oihw, w2_oihw, bn1, bn2):
    """Plain-JAX f32 reference mirroring the PyTorch forward (NCHW)."""
    def conv(x, w):
        return jax.lax.conv_general_dilated(
            x, w, window_strides=(1, 1), padding=((1, 1), (1, 1)),
            dimension_numbers=("NCHW", "OIHW", "NCHW"),
            precision=jax.lax.Precision.HIGHEST)

    def bn(x, p):
        scale = p["weight"] / jnp.sqrt(p["running_var"] + _EPS)
        bias = p["bias"] - p["running_mean"] * scale
        return x * scale[None, :, None, None] + bias[None, :, None, None]

    out = jnp.maximum(bn(conv(x_nchw, w1_oihw), bn1), 0.0)
    out = bn(conv(out, w2_oihw), bn2)
    return jnp.maximum(out + x_nchw, 0.0)


if __name__ == "__main__":
    N, C, H, W = 2, 4, 16, 16        # inplanes == planes, stride=1, downsample=None
    key = jax.random.PRNGKey(0)
    kx, kw1, kw2, kb1w, kb1b, kb1m, kb1v, kb2w, kb2b, kb2m, kb2v = \
        jax.random.split(key, 11)

    x = jax.random.normal(kx, (N, C, H, W), dtype=jnp.float32)
    w1 = 0.1 * jax.random.normal(kw1, (C, C, 3, 3), dtype=jnp.float32)  # OIHW
    w2 = 0.1 * jax.random.normal(kw2, (C, C, 3, 3), dtype=jnp.float32)

    bn1 = {
        "weight": jax.random.uniform(kb1w, (C,), minval=0.5, maxval=1.5),
        "bias": 0.1 * jax.random.normal(kb1b, (C,)),
        "running_mean": 0.1 * jax.random.normal(kb1m, (C,)),
        "running_var": jax.random.uniform(kb1v, (C,), minval=0.5, maxval=1.5),
    }
    bn2 = {
        "weight": jax.random.uniform(kb2w, (C,), minval=0.5, maxval=1.5),
        "bias": 0.1 * jax.random.normal(kb2b, (C,)),
        "running_mean": 0.1 * jax.random.normal(kb2m, (C,)),
        "running_var": jax.random.uniform(kb2v, (C,), minval=0.5, maxval=1.5),
    }

    out = basic_block_pallas(x, w1, w2, bn1, bn2)
    out = jax.block_until_ready(out)

    ref = jax.block_until_ready(basic_block_reference(x, w1, w2, bn1, bn2))
    assert out.shape == (N, C, H, W)
    # bf16 MXU path (with BN scale folded into bf16 weights) vs f32 HIGHEST reference.
    assert jnp.allclose(out, ref, atol=3e-2, rtol=3e-2), \
        f"max abs diff {float(jnp.max(jnp.abs(out - ref)))}"

    print("KERNEL_OK")
</pallas_src>

<mosaic_0001>
module attributes {stable_mosaic.version = 11 : i64} {
  func.func @basic_block_kernel(%arg0: i32, %arg1: memref<1x4x256xbf16, #tpu.memory_space<vmem>>, %arg2: memref<4x36xbf16, #tpu.memory_space<vmem>>, %arg3: memref<4x36xbf16, #tpu.memory_space<vmem>>, %arg4: memref<4x1xf32, #tpu.memory_space<vmem>>, %arg5: memref<4x1xf32, #tpu.memory_space<vmem>>, %arg6: memref<9x1x256xbf16, #tpu.memory_space<vmem>>, %arg7: memref<1x4x256xf32, #tpu.memory_space<vmem>>) attributes {dimension_semantics = [#tpu.dimension_semantics<parallel>], iteration_bounds = array<i64: 2>, scalar_prefetch = 0 : i64, scratch_operands = 0 : i64, tpu.core_type = #tpu.core_type<tc>, window_params = [{transform_indices = @transform_0, window_bounds = array<i64: 1, 4, 256>}, {pipeline_mode = #tpu.pipeline_mode<synchronous>, transform_indices = @transform_1, window_bounds = array<i64: 4, 36>}, {pipeline_mode = #tpu.pipeline_mode<synchronous>, transform_indices = @transform_2, window_bounds = array<i64: 4, 36>}, {pipeline_mode = #tpu.pipeline_mode<synchronous>, transform_indices = @transform_3, window_bounds = array<i64: 4, 1>}, {pipeline_mode = #tpu.pipeline_mode<synchronous>, transform_indices = @transform_4, window_bounds = array<i64: 4, 1>}, {pipeline_mode = #tpu.pipeline_mode<synchronous>, transform_indices = @transform_5, window_bounds = array<i64: 9, 1, 256>}, {transform_indices = @transform_6, window_bounds = array<i64: 1, 4, 256>}]} {
    %c0 = arith.constant 0 : index
    %c0_0 = arith.constant 0 : index
    %c0_1 = arith.constant 0 : index
    %0 = vector.load %arg1[%c0, %c0_0, %c0_1] : memref<1x4x256xbf16, #tpu.memory_space<vmem>>, vector<1x4x256xbf16>
    %1 = vector.shape_cast %0 : vector<1x4x256xbf16> to vector<4x256xbf16>
    %c0_2 = arith.constant 0 : index
    %c0_3 = arith.constant 0 : index
    %c0_4 = arith.constant 0 : index
    %2 = vector.load %arg6[%c0_2, %c0_3, %c0_4] : memref<9x1x256xbf16, #tpu.memory_space<vmem>>, vector<9x1x256xbf16>
    %c0_5 = arith.constant 0 : index
    %c0_6 = arith.constant 0 : index
    %3 = vector.load %arg2[%c0_5, %c0_6] : memref<4x36xbf16, #tpu.memory_space<vmem>>, vector<4x36xbf16>
    %4 = vector.extract_strided_slice %1 {offsets = [0, 239], sizes = [4, 17], strides = [1, 1]} : vector<4x256xbf16> to vector<4x17xbf16>
    %5 = vector.extract_strided_slice %1 {offsets = [0, 0], sizes = [4, 239], strides = [1, 1]} : vector<4x256xbf16> to vector<4x239xbf16>
    %6 = tpu.concatenate %4, %5 in 1 : vector<4x17xbf16>, vector<4x239xbf16> -> vector<4x256xbf16>
    %7 = vector.extract_strided_slice %2 {offsets = [0, 0, 0], sizes = [1, 1, 256], strides = [1, 1, 1]} : vector<9x1x256xbf16> to vector<1x1x256xbf16>
    %8 = vector.shape_cast %7 : vector<1x1x256xbf16> to vector<1x256xbf16>
    %9 = vector.broadcast %8 : vector<1x256xbf16> to vector<4x256xbf16>
    %10 = arith.mulf %6, %9 : vector<4x256xbf16>
    %11 = vector.extract_strided_slice %1 {offsets = [0, 240], sizes = [4, 16], strides = [1, 1]} : vector<4x256xbf16> to vector<4x16xbf16>
    %12 = vector.extract_strided_slice %1 {offsets = [0, 0], sizes = [4, 240], strides = [1, 1]} : vector<4x256xbf16> to vector<4x240xbf16>
    %13 = tpu.concatenate %11, %12 in 1 : vector<4x16xbf16>, vector<4x240xbf16> -> vector<4x256xbf16>
    %14 = vector.extract_strided_slice %2 {offsets = [1, 0, 0], sizes = [1, 1, 256], strides = [1, 1, 1]} : vector<9x1x256xbf16> to vector<1x1x256xbf16>
    %15 = vector.shape_cast %14 : vector<1x1x256xbf16> to vector<1x256xbf16>
    %16 = vector.broadcast %15 : vector<1x256xbf16> to vector<4x256xbf16>
    %17 = arith.mulf %13, %16 : vector<4x256xbf16>
    %18 = vector.extract_strided_slice %1 {offsets = [0, 241], sizes = [4, 15], strides = [1, 1]} : vector<4x256xbf16> to vector<4x15xbf16>
    %19 = vector.extract_strided_slice %1 {offsets = [0, 0], sizes = [4, 241], strides = [1, 1]} : vector<4x256xbf16> to vector<4x241xbf16>
    %20 = tpu.concatenate %18, %19 in 1 : vector<4x15xbf16>, vector<4x241xbf16> -> vector<4x256xbf16>
    %21 = vector.extract_strided_slice %2 {offsets = [2, 0, 0], sizes = [1, 1, 256], strides = [1, 1, 1]} : vector<9x1x256xbf16> to vector<1x1x256xbf16>
    %22 = vector.shape_cast %21 : vector<1x1x256xbf16> to vector<1x256xbf16>
    %23 = vector.broadcast %22 : vector<1x256xbf16> to vector<4x256xbf16>
    %24 = arith.mulf %20, %23 : vector<4x256xbf16>
    %25 = vector.extract_strided_slice %1 {offsets = [0, 255], sizes = [4, 1], strides = [1, 1]} : vector<4x256xbf16> to vector<4x1xbf16>
    %26 = vector.extract_strided_slice %1 {offsets = [0, 0], sizes = [4, 255], strides = [1, 1]} : vector<4x256xbf16> to vector<4x255xbf16>
    %27 = tpu.concatenate %25, %26 in 1 : vector<4x1xbf16>, vector<4x255xbf16> -> vector<4x256xbf16>
    %28 = vector.extract_strided_slice %2 {offsets = [3, 0, 0], sizes = [1, 1, 256], strides = [1, 1, 1]} : vector<9x1x256xbf16> to vector<1x1x256xbf16>
    %29 = vector.shape_cast %28 : vector<1x1x256xbf16> to vector<1x256xbf16>
    %30 = vector.broadcast %29 : vector<1x256xbf16> to vector<4x256xbf16>
    %31 = arith.mulf %27, %30 : vector<4x256xbf16>
    %32 = vector.extract_strided_slice %1 {offsets = [0, 1], sizes = [4, 255], strides = [1, 1]} : vector<4x256xbf16> to vector<4x255xbf16>
    %33 = vector.extract_strided_slice %1 {offsets = [0, 0], sizes = [4, 1], strides = [1, 1]} : vector<4x256xbf16> to vector<4x1xbf16>
    %34 = tpu.concatenate %32, %33 in 1 : vector<4x255xbf16>, vector<4x1xbf16> -> vector<4x256xbf16>
    %35 = vector.extract_strided_slice %2 {offsets = [5, 0, 0], sizes = [1, 1, 256], strides = [1, 1, 1]} : vector<9x1x256xbf16> to vector<1x1x256xbf16>
    %36 = vector.shape_cast %35 : vector<1x1x256xbf16> to vector<1x256xbf16>
    %37 = vector.broadcast %36 : vector<1x256xbf16> to vector<4x256xbf16>
    %38 = arith.mulf %34, %37 : vector<4x256xbf16>
    %39 = vector.extract_strided_slice %1 {offsets = [0, 15], sizes = [4, 241], strides = [1, 1]} : vector<4x256xbf16> to vector<4x241xbf16>
    %40 = vector.extract_strided_slice %1 {offsets = [0, 0], sizes = [4, 15], strides = [1, 1]} : vector<4x256xbf16> to vector<4x15xbf16>
    %41 = tpu.concatenate %39, %40 in 1 : vector<4x241xbf16>, vector<4x15xbf16> -> vector<4x256xbf16>
    %42 = vector.extract_strided_slice %2 {offsets = [6, 0, 0], sizes = [1, 1, 256], strides = [1, 1, 1]} : vector<9x1x256xbf16> to vector<1x1x256xbf16>
    %43 = vector.shape_cast %42 : vector<1x1x256xbf16> to vector<1x256xbf16>
    %44 = vector.broadcast %43 : vector<1x256xbf16> to vector<4x256xbf16>
    %45 = arith.mulf %41, %44 : vector<4x256xbf16>
    %46 = vector.extract_strided_slice %1 {offsets = [0, 16], sizes = [4, 240], strides = [1, 1]} : vector<4x256xbf16> to vector<4x240xbf16>
    %47 = vector.extract_strided_slice %1 {offsets = [0, 0], sizes = [4, 16], strides = [1, 1]} : vector<4x256xbf16> to vector<4x16xbf16>
    %48 = tpu.concatenate %46, %47 in 1 : vector<4x240xbf16>, vector<4x16xbf16> -> vector<4x256xbf16>
    %49 = vector.extract_strided_slice %2 {offsets = [7, 0, 0], sizes = [1, 1, 256], strides = [1, 1, 1]} : vector<9x1x256xbf16> to vector<1x1x256xbf16>
    %50 = vector.shape_cast %49 : vector<1x1x256xbf16> to vector<1x256xbf16>
    %51 = vector.broadcast %50 : vector<1x256xbf16> to vector<4x256xbf16>
    %52 = arith.mulf %48, %51 : vector<4x256xbf16>
    %53 = vector.extract_strided_slice %1 {offsets = [0, 17], sizes = [4, 239], strides = [1, 1]} : vector<4x256xbf16> to vector<4x239xbf16>
    %54 = vector.extract_strided_slice %1 {offsets = [0, 0], sizes = [4, 17], strides = [1, 1]} : vector<4x256xbf16> to vector<4x17xbf16>
    %55 = tpu.concatenate %53, %54 in 1 : vector<4x239xbf16>, vector<4x17xbf16> -> vector<4x256xbf16>
    %56 = vector.extract_strided_slice %2 {offsets = [8, 0, 0], sizes = [1, 1, 256], strides = [1, 1, 1]} : vector<9x1x256xbf16> to vector<1x1x256xbf16>
    %57 = vector.shape_cast %56 : vector<1x1x256xbf16> to vector<1x256xbf16>
    %58 = vector.broadcast %57 : vector<1x256xbf16> to vector<4x256xbf16>
    %59 = arith.mulf %55, %58 : vector<4x256xbf16>
    %60 = tpu.concatenate %10, %17, %24, %31, %1, %38, %45, %52, %59 in 0 : vector<4x256xbf16>, vector<4x256xbf16>, vector<4x256xbf16>, vector<4x256xbf16>, vector<4x256xbf16>, vector<4x256xbf16>, vector<4x256xbf16>, vector<4x256xbf16>, vector<4x256xbf16> -> vector<36x256xbf16>
    %cst = arith.constant dense<0.000000e+00> : vector<4x256xf32>
    %61 = tpu.matmul %3, %60, %cst {dimension_numbers = #tpu.dot_dimension_numbers<[1], [0], [0], [1], [0, 0, 1, 1], [], []>} : vector<4x36xbf16>, vector<36x256xbf16>, vector<4x256xf32> -> vector<4x256xf32>
    %c0_7 = arith.constant 0 : index
    %c0_8 = arith.constant 0 : index
    %62 = vector.load %arg4[%c0_7, %c0_8] : memref<4x1xf32, #tpu.memory_space<vmem>>, vector<4x1xf32>
    %63 = vector.broadcast %62 : vector<4x1xf32> to vector<4x256xf32>
    %64 = arith.addf %61, %63 : vector<4x256xf32>
    %cst_9 = arith.constant 0.000000e+00 : f32
    %65 = vector.broadcast %cst_9 : f32 to vector<4x256xf32>
    %66 = arith.maximumf %64, %65 : vector<4x256xf32>
    %c0_10 = arith.constant 0 : index
    %c0_11 = arith.constant 0 : index
    %67 = vector.load %arg3[%c0_10, %c0_11] : memref<4x36xbf16, #tpu.memory_space<vmem>>, vector<4x36xbf16>
    %68 = arith.truncf %66 : vector<4x256xf32> to vector<4x256xbf16>
    %69 = vector.extract_strided_slice %68 {offsets = [0, 239], sizes = [4, 17], strides = [1, 1]} : vector<4x256xbf16> to vector<4x17xbf16>
    %70 = vector.extract_strided_slice %68 {offsets = [0, 0], sizes = [4, 239], strides = [1, 1]} : vector<4x256xbf16> to vector<4x239xbf16>
    %71 = tpu.concatenate %69, %70 in 1 : vector<4x17xbf16>, vector<4x239xbf16> -> vector<4x256xbf16>
    %72 = vector.extract_strided_slice %2 {offsets = [0, 0, 0], sizes = [1, 1, 256], strides = [1, 1, 1]} : vector<9x1x256xbf16> to vector<1x1x256xbf16>
    %73 = vector.shape_cast %72 : vector<1x1x256xbf16> to vector<1x256xbf16>
    %74 = vector.broadcast %73 : vector<1x256xbf16> to vector<4x256xbf16>
    %75 = arith.mulf %71, %74 : vector<4x256xbf16>
    %76 = vector.extract_strided_slice %68 {offsets = [0, 240], sizes = [4, 16], strides = [1, 1]} : vector<4x256xbf16> to vector<4x16xbf16>
    %77 = vector.extract_strided_slice %68 {offsets = [0, 0], sizes = [4, 240], strides = [1, 1]} : vector<4x256xbf16> to vector<4x240xbf16>
    %78 = tpu.concatenate %76, %77 in 1 : vector<4x16xbf16>, vector<4x240xbf16> -> vector<4x256xbf16>
    %79 = vector.extract_strided_slice %2 {offsets = [1, 0, 0], sizes = [1, 1, 256], strides = [1, 1, 1]} : vector<9x1x256xbf16> to vector<1x1x256xbf16>
    %80 = vector.shape_cast %79 : vector<1x1x256xbf16> to vector<1x256xbf16>
    %81 = vector.broadcast %80 : vector<1x256xbf16> to vector<4x256xbf16>
    %82 = arith.mulf %78, %81 : vector<4x256xbf16>
    %83 = vector.extract_strided_slice %68 {offsets = [0, 241], sizes = [4, 15], strides = [1, 1]} : vector<4x256xbf16> to vector<4x15xbf16>
    %84 = vector.extract_strided_slice %68 {offsets = [0, 0], sizes = [4, 241], strides = [1, 1]} : vector<4x256xbf16> to vector<4x241xbf16>
    %85 = tpu.concatenate %83, %84 in 1 : vector<4x15xbf16>, vector<4x241xbf16> -> vector<4x256xbf16>
    %86 = vector.extract_strided_slice %2 {offsets = [2, 0, 0], sizes = [1, 1, 256], strides = [1, 1, 1]} : vector<9x1x256xbf16> to vector<1x1x256xbf16>
    %87 = vector.shape_cast %86 : vector<1x1x256xbf16> to vector<1x256xbf16>
    %88 = vector.broadcast %87 : vector<1x256xbf16> to vector<4x256xbf16>
    %89 = arith.mulf %85, %88 : vector<4x256xbf16>
    %90 = vector.extract_strided_slice %68 {offsets = [0, 255], sizes = [4, 1], strides = [1, 1]} : vector<4x256xbf16> to vector<4x1xbf16>
    %91 = vector.extract_strided_slice %68 {offsets = [0, 0], sizes = [4, 255], strides = [1, 1]} : vector<4x256xbf16> to vector<4x255xbf16>
    %92 = tpu.concatenate %90, %91 in 1 : vector<4x1xbf16>, vector<4x255xbf16> -> vector<4x256xbf16>
    %93 = vector.extract_strided_slice %2 {offsets = [3, 0, 0], sizes = [1, 1, 256], strides = [1, 1, 1]} : vector<9x1x256xbf16> to vector<1x1x256xbf16>
    %94 = vector.shape_cast %93 : vector<1x1x256xbf16> to vector<1x256xbf16>
    %95 = vector.broadcast %94 : vector<1x256xbf16> to vector<4x256xbf16>
    %96 = arith.mulf %92, %95 : vector<4x256xbf16>
    %97 = vector.extract_strided_slice %68 {offsets = [0, 1], sizes = [4, 255], strides = [1, 1]} : vector<4x256xbf16> to vector<4x255xbf16>
    %98 = vector.extract_strided_slice %68 {offsets = [0, 0], sizes = [4, 1], strides = [1, 1]} : vector<4x256xbf16> to vector<4x1xbf16>
    %99 = tpu.concatenate %97, %98 in 1 : vector<4x255xbf16>, vector<4x1xbf16> -> vector<4x256xbf16>
    %100 = vector.extract_strided_slice %2 {offsets = [5, 0, 0], sizes = [1, 1, 256], strides = [1, 1, 1]} : vector<9x1x256xbf16> to vector<1x1x256xbf16>
    %101 = vector.shape_cast %100 : vector<1x1x256xbf16> to vector<1x256xbf16>
    %102 = vector.broadcast %101 : vector<1x256xbf16> to vector<4x256xbf16>
    %103 = arith.mulf %99, %102 : vector<4x256xbf16>
    %104 = vector.extract_strided_slice %68 {offsets = [0, 15], sizes = [4, 241], strides = [1, 1]} : vector<4x256xbf16> to vector<4x241xbf16>
    %105 = vector.extract_strided_slice %68 {offsets = [0, 0], sizes = [4, 15], strides = [1, 1]} : vector<4x256xbf16> to vector<4x15xbf16>
    %106 = tpu.concatenate %104, %105 in 1 : vector<4x241xbf16>, vector<4x15xbf16> -> vector<4x256xbf16>
    %107 = vector.extract_strided_slice %2 {offsets = [6, 0, 0], sizes = [1, 1, 256], strides = [1, 1, 1]} : vector<9x1x256xbf16> to vector<1x1x256xbf16>
    %108 = vector.shape_cast %107 : vector<1x1x256xbf16> to vector<1x256xbf16>
    %109 = vector.broadcast %108 : vector<1x256xbf16> to vector<4x256xbf16>
    %110 = arith.mulf %106, %109 : vector<4x256xbf16>
    %111 = vector.extract_strided_slice %68 {offsets = [0, 16], sizes = [4, 240], strides = [1, 1]} : vector<4x256xbf16> to vector<4x240xbf16>
    %112 = vector.extract_strided_slice %68 {offsets = [0, 0], sizes = [4, 16], strides = [1, 1]} : vector<4x256xbf16> to vector<4x16xbf16>
    %113 = tpu.concatenate %111, %112 in 1 : vector<4x240xbf16>, vector<4x16xbf16> -> vector<4x256xbf16>
    %114 = vector.extract_strided_slice %2 {offsets = [7, 0, 0], sizes = [1, 1, 256], strides = [1, 1, 1]} : vector<9x1x256xbf16> to vector<1x1x256xbf16>
    %115 = vector.shape_cast %114 : vector<1x1x256xbf16> to vector<1x256xbf16>
    %116 = vector.broadcast %115 : vector<1x256xbf16> to vector<4x256xbf16>
    %117 = arith.mulf %113, %116 : vector<4x256xbf16>
    %118 = vector.extract_strided_slice %68 {offsets = [0, 17], sizes = [4, 239], strides = [1, 1]} : vector<4x256xbf16> to vector<4x239xbf16>
    %119 = vector.extract_strided_slice %68 {offsets = [0, 0], sizes = [4, 17], strides = [1, 1]} : vector<4x256xbf16> to vector<4x17xbf16>
    %120 = tpu.concatenate %118, %119 in 1 : vector<4x239xbf16>, vector<4x17xbf16> -> vector<4x256xbf16>
    %121 = vector.extract_strided_slice %2 {offsets = [8, 0, 0], sizes = [1, 1, 256], strides = [1, 1, 1]} : vector<9x1x256xbf16> to vector<1x1x256xbf16>
    %122 = vector.shape_cast %121 : vector<1x1x256xbf16> to vector<1x256xbf16>
    %123 = vector.broadcast %122 : vector<1x256xbf16> to vector<4x256xbf16>
    %124 = arith.mulf %120, %123 : vector<4x256xbf16>
    %125 = tpu.concatenate %75, %82, %89, %96, %68, %103, %110, %117, %124 in 0 : vector<4x256xbf16>, vector<4x256xbf16>, vector<4x256xbf16>, vector<4x256xbf16>, vector<4x256xbf16>, vector<4x256xbf16>, vector<4x256xbf16>, vector<4x256xbf16>, vector<4x256xbf16> -> vector<36x256xbf16>
    %cst_12 = arith.constant dense<0.000000e+00> : vector<4x256xf32>
    %126 = tpu.matmul %67, %125, %cst_12 {dimension_numbers = #tpu.dot_dimension_numbers<[1], [0], [0], [1], [0, 0, 1, 1], [], []>} : vector<4x36xbf16>, vector<36x256xbf16>, vector<4x256xf32> -> vector<4x256xf32>
    %c0_13 = arith.constant 0 : index
    %c0_14 = arith.constant 0 : index
    %127 = vector.load %arg5[%c0_13, %c0_14] : memref<4x1xf32, #tpu.memory_space<vmem>>, vector<4x1xf32>
    %128 = vector.broadcast %127 : vector<4x1xf32> to vector<4x256xf32>
    %129 = arith.addf %126, %128 : vector<4x256xf32>
    %130 = arith.extf %1 : vector<4x256xbf16> to vector<4x256xf32>
    %131 = arith.addf %129, %130 : vector<4x256xf32>
    %cst_15 = arith.constant 0.000000e+00 : f32
    %132 = vector.broadcast %cst_15 : f32 to vector<4x256xf32>
    %133 = arith.maximumf %131, %132 : vector<4x256xf32>
    %c0_16 = arith.constant 0 : index
    %c0_17 = arith.constant 0 : index
    %c0_18 = arith.constant 0 : index
    %134 = vector.load %arg7[%c0_16, %c0_17, %c0_18] : memref<1x4x256xf32, #tpu.memory_space<vmem>>, vector<1x4x256xf32>
    %135 = vector.shape_cast %134 : vector<1x4x256xf32> to vector<4x256xf32>
    %136 = vector.shape_cast %133 : vector<4x256xf32> to vector<1x4x256xf32>
    tpu.vector_store %arg7[%c0_16, %c0_17, %c0_18], %136 {strides = array<i32>} : memref<1x4x256xf32, #tpu.memory_space<vmem>>, vector<1x4x256xf32>,
    return
  }
  func.func @transform_0(%arg0: i32) -> (i32, i32, i32) {
    %c0_i32 = arith.constant 0 : i32
    %c0_i32_0 = arith.constant 0 : i32
    %c0_i32_1 = arith.constant 0 : i32
    return %arg0, %c0_i32, %c0_i32_0 : i32, i32, i32
  }
  func.func @transform_1(%arg0: i32) -> (i32, i32) {
    %c0_i32 = arith.constant 0 : i32
    %c0_i32_0 = arith.constant 0 : i32
    %c0_i32_1 = arith.constant 0 : i32
    return %c0_i32, %c0_i32_0 : i32, i32
  }
  func.func @transform_2(%arg0: i32) -> (i32, i32) {
    %c0_i32 = arith.constant 0 : i32
    %c0_i32_0 = arith.constant 0 : i32
    %c0_i32_1 = arith.constant 0 : i32
    return %c0_i32, %c0_i32_0 : i32, i32
  }
  func.func @transform_3(%arg0: i32) -> (i32, i32) {
    %c0_i32 = arith.constant 0 : i32
    %c0_i32_0 = arith.constant 0 : i32
    %c0_i32_1 = arith.constant 0 : i32
    return %c0_i32, %c0_i32_0 : i32, i32
  }
  func.func @transform_4(%arg0: i32) -> (i32, i32) {
    %c0_i32 = arith.constant 0 : i32
    %c0_i32_0 = arith.constant 0 : i32
    %c0_i32_1 = arith.constant 0 : i32
    return %c0_i32, %c0_i32_0 : i32, i32
  }
  func.func @transform_5(%arg0: i32) -> (i32, i32, i32) {
    %c0_i32 = arith.constant 0 : i32
    %c0_i32_0 = arith.constant 0 : i32
    %c0_i32_1 = arith.constant 0 : i32
    %c0_i32_2 = arith.constant 0 : i32
    return %c0_i32, %c0_i32_0, %c0_i32_1 : i32, i32, i32
  }
  func.func @transform_6(%arg0: i32) -> (i32, i32, i32) {
    %c0_i32 = arith.constant 0 : i32
    %c0_i32_0 = arith.constant 0 : i32
    %c0_i32_1 = arith.constant 0 : i32
    return %arg0, %c0_i32, %c0_i32_0 : i32, i32, i32
  }
}

</mosaic_0001>

<bundles_post_ra>
// kernel: tpu_custom_call.1
= control target key start
LH: loop header
LB: loop body
LE: loop exit
PB: predicated region body
PF: predicated region fallthrough
CT: control target
= control target key end

     0   :  { %11 = vsyncpa [#allocation3], 0  ;;  %s1649_s0 = inlined_call_operand.vmem [shape: bf16[2,4,256], index: 0, kind: input, shape index: {}]   ;;  %s1650_s1 = inlined_call_operand.vmem [shape: bf16[4,36], index: 1, kind: input, shape index: {}]   ;;  %s1651_s2 = inlined_call_operand.vmem [shape: bf16[4,36], index: 2, kind: input, shape index: {}]   ;;  %s1652_s3 = inlined_call_operand.vmem [shape: f32[4,1], index: 3, kind: input, shape index: {}]   ;;  %s1653_s4 = inlined_call_operand.vmem [shape: f32[4,1], index: 4, kind: input, shape index: {}]   ;;  %s1654_s5 = inlined_call_operand.vmem [shape: bf16[9,1,256], index: 5, kind: input, shape index: {}]   ;;  %s1655_s6 = inlined_call_operand.hbm [shape: f32[2,4,256], index: 6, kind: output, shape index: {}]  }
   0x1   :  { %13 = vsyncpa [#allocation3 + $0x1], 0  ;;  %s1282_s21 = smov 0   ;;  %s1284_s22 = smov 0  }
   0x2   :  { %s1286_s23 = smov 0   ;;  %s1288_s24 = smov 0  }
   0x3 LB: > { %s1303_s25 = sadd.s32 4294967295, %s1233_s24   ;;  %s1096_s26 = sadd.s32 4294967294, %s1233_s24   ;;  %s1233_s24 = sphi %s1288_s24, %s1664_s24   ;;  %s1229_s23 = sphi %s1286_s23, %s1663_s23   ;;  %s1225_s22 = sphi %s1284_s22, %s1662_s22   ;;  %s1221_s21 = sphi %s1282_s21, %s1661_s21  }
   0x4   : > { %s1307_s27 = sadd.s32 1, %s1233_s24   ;;  %s157_s28 = sadd.s32 1, %s1229_s23 }
   0x5   : > { %s154_s29 = ssub.s32 %s1233_s24, %s1307_s27  ;;  %p167_p0 = scmp.ne.s32.totalorder %s1229_s23, %s1225_s22 }
   0x6   : > { %p155_p1 = scmp.eq.s32.totalorder %s154_s29, 0  ;;  %p168_p2 = scmp.eq.s32.totalorder %s1303_s25, 1 }
   0x7   : > { %p173_p3 = scmp.ne.s32.totalorder %s1225_s22, %s1221_s21  ;;  %p174_p4 = scmp.eq.s32.totalorder %s1096_s26, 1 }
   0x8   : > { %s1318_s30 = scalar_select %p155_p1, %s1229_s23, %s157_s28  }
   0x9   : > { %p1320_p5 = por %p168_p2, %p167_p0  ;;  %p1324_p6 = por %p174_p4, %p173_p3 }
   0xa   : > { %p1099_p7 = scmp.ge.s32.totalorder %s1233_s24, 1  ;;  %p215_p8 = scmp.lt.s32.totalorder %s1233_s24, 3 }
   0xc   : > { %p216_p9 = pnand %p1099_p7, %p215_p8 }
   0xd   : > { %p245_p10 = scmp.lt.s32.totalorder (!%p216_p9), %s1303_s25, 1  ;;  %s1236_s14 = smov (!%p216_p9), 113  }
   0xe   : > { %219 = sbr.rel (%p216_p9) target bundleno = 753 (0x2f1), region = 44  ;;  %s1237_s15 = smov (!%p216_p9), 127  }
   0xf   : > { %s1238_s16 = smov (!%p216_p9), 111   ;;  %s1239_s17 = smov (!%p216_p9), 112  }
  0x10   : > { %s1240_s18 = smov (!%p216_p9), 16   ;;  %s1241_s19 = smov (!%p216_p9), 15  }
  0x11   : > { %s1656_s20 = smov (!%p216_p9), 17   ;;  %s1244_s26 = smov (!%p216_p9), 1  }
  0x13   : > { %v265_v0 = vlaneseq  ;;  %v1235_v1 = vmov 1983009808   ;;  %s246_s9 = scalar_select %p245_p10, %s1303_s25, 1  ;;  %v1242_v9 = vmov 0   ;;  %v737_v10 = vld [vmem:[%s1652_s3] sm:$0xf] }
  0x14   : > { %v263_v2 = vunpack.c.l.s4 %v1235_v1  ;;  %785 = vmatprep.mubr.bf16.mxu0 %v1242_v9  ;;  %1172 = vset.pattern.permute.xlu0 %v1242_v9  ;;  %v1245_v11 = vmov 1966171168   ;;  %v1108_v14 = vld.sshfl [vmem:[%s1654_s5 + $0xc] sm:$0x11 pattern:$0x75316420] }
  0x15   : > { %v266_v3 = vshrl.u32 %v265_v0, 7  ;;  %s1120_s10 = sshll.u32 %s246_s9, 2  ;;  %1000 = vmatprep.mubr.bf16.mxu1 %v1242_v9  ;;  %v292_v12 = vunpack.c.l.s4 %v1245_v11  ;;  %v1107_v15 = vld.sshfl [vmem:[%s1654_s5 + $0xa] sm:$0x11 pattern:$0x75316420]  ;;  %v545_v18 = vcombine.high %v1108_v14, %v1108_v14 }
  0x16   : > { %v264_v4 = vunpack.c.0.s8 %v263_v2  ;;  %s249_s13 = scalar_lea.vmem %s1649_s0, %s1120_s10  ;;  %v1110_v16 = vld.sshfl [vmem:[%s1654_s5 + $0x10] sm:$0x11 pattern:$0x75316420]  ;;  %v494_v20 = vcombine.high %v1107_v15, %v1107_v15  ;;  %vm529_vm0 = vcmask 924672   ;;  %vm631_vm1 = vcmask 908288  }
  0x17   : > { %v1335_v6 = vld [vmem:[%s249_s13] sm:$0xf]  ;;  %v293_v13 = vunpack.c.0.s8 %v292_v12  ;;  %v1109_v19 = vld.sshfl [vmem:[%s1654_s5 + $0xe] sm:$0x11 pattern:$0x75316420]  ;;  %v647_v21 = vcombine.high %v1110_v16, %v1110_v16 }
  0x18   : > { %v267_v5 = vsub.s32 %v264_v4, %v266_v3  ;;  %v596_v22 = vcombine.high %v1109_v19, %v1109_v19  ;;  %v1401_v33 = vsub.s32 0, %v266_v3  ;;  %vm478_vm2 = vcmask 1039360   ;;  %v1104_v44 = vld.sshfl [vmem:[%s1654_s5 + $0x2] sm:$0x11 pattern:$0x75316420] }
  0x19   : > { %v1388_v17 = vsub.s32 %v293_v13, %v266_v3  ;;  %vm702_vm3 = vcmask 1041408   ;;  %vm580_vm4 = vcmask 916480   ;;  %v1103_v47 = vld.sshfl [vmem:[%s1654_s5] sm:$0x11 pattern:$0x75316420]  ;;  %v341_v53 = vcombine.high %v1104_v44, %v1104_v44 }
  0x1a   : > { %v1338_v7 = vrot.slane %v1335_v6, %v267_v5  ;;  %vm709_vm5 = vcmask 1043456   ;;  %vm714_vm6 = vcmask 1045504   ;;  %v1105_v60 = vld.sshfl [vmem:[%s1654_s5 + $0x4] sm:$0x11 pattern:$0x75316420]  ;;  %v290_v61 = vcombine.high %v1103_v47, %v1103_v47 }
  0x1b   : > { %v552_v23 = vrot.slane %v1108_v14, %v1388_v17  ;;  %v559_v24 = vrot.slane %v545_v18, %v1388_v17  ;;  %v501_v25 = vrot.slane %v1107_v15, %v1388_v17  ;;  %v508_v26 = vrot.slane %v494_v20, %v1388_v17  ;;  %v1106_v9 = vld.sshfl [vmem:[%s1654_s5 + $0x6] sm:$0x11 pattern:$0x75316420]  ;;  %s1660_s10 = smov 17  }
  0x1c   : > { %525 = vrot.lane.b32.xlu1 %v1338_v7, %s1236_s14  ;;  %474 = vrot.lane.b32.xlu0 %v1338_v7, %s1237_s15  ;;  %v1346_v8 = vcombine.high %v1338_v7, %v1338_v7  ;;  %v661_v27 = vrot.slane %v647_v21, %v1388_v17  ;;  %v654_v28 = vrot.slane %v1110_v16, %v1388_v17  ;;  %vm325_vm7 = vcmask 130048  }
  0x1d   : > { %v603_v29 = vrot.slane %v1109_v19, %v1388_v17  ;;  %v610_v32 = vrot.slane %v596_v22, %v1388_v17  ;;  %v561_v34 = vpack.i.b16 %v552_v23, %v552_v23  ;;  %v568_v35 = vpack.i.b16 %v559_v24, %v559_v24 }
  0x1e   : > { %v510_v36 = vpack.i.b16 %v501_v25, %v501_v25  ;;  %v517_v37 = vpack.i.b16 %v508_v26, %v508_v26  ;;  %v670_v38 = vpack.i.b16 %v661_v27, %v661_v27  ;;  %v663_v39 = vpack.i.b16 %v654_v28, %v654_v28 }
  0x1f   : > { %v612_v40 = vpack.i.b16 %v603_v29, %v603_v29  ;;  %v619_v43 = vpack.i.b16 %v610_v32, %v610_v32  ;;  %v1407_v45 = vrot.slane %v561_v34, %v1401_v33  ;;  %v1410_v46 = vrot.slane %v568_v35, %v1401_v33 }
  0x20   : > { %627 = vrot.lane.b32.xlu0 %v1338_v7, %s1238_s16  ;;  %527 = vrot.lane.b32.xlu1 %v1346_v8, %s1236_s14  ;;  %v1416_v48 = vrot.slane %v510_v36, %v1401_v33  ;;  %v1419_v49 = vrot.slane %v517_v37, %v1401_v33  ;;  %v1422_v50 = vrot.slane %v670_v38, %v1401_v33  ;;  %vm376_vm8 = vcmask 121856  }
  0x21   : > { %v1425_v51 = vrot.slane %v663_v39, %v1401_v33  ;;  %v1428_v52 = vrot.slane %v612_v40, %v1401_v33  ;;  %v348_v54 = vrot.slane %v1104_v44, %v1388_v17  ;;  %v1434_v59 = vrot.slane %v619_v43, %v1401_v33 }
  0x22   : > { %v355_v12 = vrot.slane %v341_v53, %v1388_v17  ;;  %v392_v13 = vcombine.high %v1105_v60, %v1105_v60  ;;  %v297_v20 = vrot.slane %v1103_v47, %v1388_v17  ;;  %v304_v23 = vrot.slane %v290_v61, %v1388_v17 }
  0x23   : > { %v443_v24 = vcombine.high %v1106_v9, %v1106_v9  ;;  %v357_v37 = vpack.i.b16 %v348_v54, %v348_v54  ;;  %v450_v44 = vrot.slane %v1106_v9, %v1388_v17  ;;  %vm274_vm9 = vcmask 138240  }
  0x24   : > { %629 = vrot.lane.b32.xlu1 %v1346_v8, %s1238_s16  ;;  %476 = vrot.lane.b32.xlu0 %v1346_v8, %s1237_s15  ;;  %v406_v32 = vrot.slane %v392_v13, %v1388_v17  ;;  %v364_v38 = vpack.i.b16 %v355_v12, %v355_v12  ;;  %vm427_vm10 = vcmask 7168   ;;  %vm743_vm11 = vcmask 293888  }
  0x25   : > { %v457_v47 = vrot.slane %v443_v24, %v1388_v17  ;;  %v1474_v54 = vrot.slane %v357_v37, %v1401_v33 }
  0x28   : > { %578 = vrot.lane.b32.xlu1 %v1346_v8, %s1239_s17  ;;  %576 = vrot.lane.b32.xlu0 %v1338_v7, %s1239_s17 }
  0x2c   : > { %323 = vrot.lane.b32.xlu1 %v1338_v7, %s1240_s18  ;;  %321 = vrot.lane.b32.xlu0 %v1346_v8, %s1240_s18 }
  0x30   : > { %374 = vrot.lane.b32.xlu1 %v1338_v7, %s1241_s19  ;;  %372 = vrot.lane.b32.xlu0 %v1346_v8, %s1241_s19 }
  0x34   : > { %272 = vrot.lane.b32.xlu1 %v1338_v7, %s1656_s20  ;;  %270 = vrot.lane.b32.xlu0 %v1346_v8, %s1656_s20 }
  0x38   : > { %425 = vrot.lane.b32.xlu1 %v1338_v7, %s1244_s26  ;;  %423 = vrot.lane.b32.xlu0 %v1346_v8, %s1244_s26 }
  0x3c   : > { %740 = vperm.xlu0 %1172, %v737_v10  }
  0x8e   : > { %v526_v30 = vpop.permute.xlu1 %525  ;;  %v475_v31 = vpop.permute.xlu0 %474 }
  0x92   : > { %v628_v41 = vpop.permute.xlu0 %627  ;;  %v528_v42 = vpop.permute.xlu1 %527 }
  0x93   : > { %v530_v55 = vsel %vm529_vm0, %v526_v30, %v528_v42  ;;  %v535_v56 = vsel %vm529_vm0, %v528_v42, %v526_v30  ;;  %v313_v42 = vpack.i.b16 %v304_v23, %v304_v23 }
  0x94   : > { %v574_v10 = vmul.bf16 %v1407_v45, %v530_v55  ;;  %v575_v11 = vmul.bf16 %v1410_v46, %v535_v56  ;;  %v415_v55 = vpack.i.b16 %v406_v32, %v406_v32  ;;  %v1477_v56 = vrot.slane %v364_v38, %v1401_v33 }
  0x96   : > { %v630_v57 = vpop.permute.xlu1 %629  ;;  %v477_v58 = vpop.permute.xlu0 %476  ;;  %v696_v29 = vrot.slane %v574_v10, 4  ;;  %v697_v30 = vrot.slane %v575_v11, 4 }
  0x97   : > { %v632_v62 = vsel %vm631_vm1, %v628_v41, %v630_v57  ;;  %v637_v63 = vsel %vm631_vm1, %v630_v57, %v628_v41  ;;  %v479_v0 = vsel %vm478_vm2, %v475_v31, %v477_v58  ;;  %v484_v1 = vsel %vm478_vm2, %v477_v58, %v475_v31 }
  0x98   : > { %v523_v2 = vmul.bf16 %v1416_v48, %v479_v0  ;;  %v524_v3 = vmul.bf16 %v1419_v49, %v484_v1  ;;  %v677_v4 = vmul.bf16 %v1422_v50, %v637_v63  ;;  %v676_v5 = vmul.bf16 %v1425_v51, %v632_v62 }
  0x99   : > { %v399_v31 = vrot.slane %v1105_v60, %v1388_v17  ;;  %v1485_v62 = vrot.slane %v313_v42, %v1401_v33  ;;  %v459_v63 = vpack.i.b16 %v450_v44, %v450_v44  ;;  %v466_v0 = vpack.i.b16 %v457_v47, %v457_v47 }
  0x9a   : > { %v692_v14 = vrot.slane %v523_v2, 6  ;;  %v693_v15 = vrot.slane %v524_v3, 6  ;;  %1111 = vmatprep.subr.msk.bf16.mxu0 %vm702_vm3, %v677_v4  ;;  %v579_v16 = vpop.permute.xlu1 %578  ;;  %v577_v18 = vpop.permute.xlu0 %576  ;;  %v748_v19 = vsel %vm702_vm3, %v676_v5, 0  ;;  %v1491_v2 = vrot.slane %v415_v55, %v1401_v33 }
  0x9b   : > { %v581_v21 = vsel %vm580_vm4, %v577_v18, %v579_v16  ;;  %v586_v22 = vsel %vm580_vm4, %v579_v16, %v577_v18  ;;  %764 = vmatpush1.bf16.msra.mxu0 %v748_v19  ;;  %v408_v53 = vpack.i.b16 %v399_v31, %v399_v31  ;;  %v1502_v16 = vrot.slane %v459_v63, %v1401_v33 }
  0x9c   : > { %v625_v25 = vmul.bf16 %v1428_v52, %v581_v21  ;;  %v626_v26 = vmul.bf16 %v1434_v59, %v586_v22  ;;  %v726_v27 = vsel %vm702_vm3, %v1346_v8, %v693_v15  ;;  %v723_v28 = vsel %vm702_vm3, %v1338_v7, %v692_v14 }
  0x9d   : > { %v730_v40 = vsel %vm709_vm5, %v726_v27, %v697_v30  ;;  %v728_v41 = vsel %vm709_vm5, %v723_v28, %v696_v29  ;;  %v306_v8 = vpack.i.b16 %v297_v20, %v297_v20  ;;  %v1488_v1 = vrot.slane %v408_v53, %v1401_v33 }
  0x9e   : > { %v700_v34 = vrot.slane %v625_v25, 2  ;;  %v701_v35 = vrot.slane %v626_v26, 2  ;;  %v324_v36 = vpop.permute.xlu1 %323  ;;  %v322_v39 = vpop.permute.xlu0 %321  ;;  %v1505_v18 = vrot.slane %v466_v0, %v1401_v33 }
  0x9f   : > { %v326_v60 = vsel %vm325_vm7, %v324_v36, %v322_v39  ;;  %v331_v61 = vsel %vm325_vm7, %v322_v39, %v324_v36  ;;  %v1482_v17 = vrot.slane %v306_v8, %v1401_v33  ;;  %v260_v39 = vld [vmem:[%s1650_s1] sm:$0x3] }
  0xa0   : > { %v735_v7 = vsel %vm714_vm6, %v730_v40, %v701_v35  ;;  %v732_v43 = vsel %vm714_vm6, %v728_v41, %v700_v34  ;;  %v370_v3 = vmul.bf16 %v1474_v54, %v331_v61  ;;  %v371_v4 = vmul.bf16 %v1477_v56, %v326_v60 }
  0xa1   : > { %765 = vmatprep.subr.bf16.mxu0 %v735_v7 }
  0xa2   : > { %v375_v57 = vpop.permute.xlu1 %374  ;;  %766 = vmatpush1.bf16.msra.mxu0 %v732_v43  ;;  %v373_v58 = vpop.permute.xlu0 %372  ;;  %v680_v21 = vrot.slane %v370_v3, 6  ;;  %v681_v22 = vrot.slane %v371_v4, 6 }
  0xa3   : > { %v377_v5 = vsel %vm376_vm8, %v375_v57, %v373_v58  ;;  %v382_v9 = vsel %vm376_vm8, %v373_v58, %v375_v57  ;;  %v953_v58 = vld [vmem:[%s1653_s4] sm:$0xf] }
  0xa4   : > { %v421_v19 = vmul.bf16 %v1488_v1, %v382_v9  ;;  %v422_v20 = vmul.bf16 %v1491_v2, %v377_v5 }
  0xa6   : > { %v273_v10 = vpop.permute.xlu1 %272  ;;  %v271_v11 = vpop.permute.xlu0 %270  ;;  %v684_v30 = vrot.slane %v421_v19, 4  ;;  %v685_v31 = vrot.slane %v422_v20, 4 }
  0xa7   : > { %v275_v12 = vsel %vm274_vm9, %v273_v10, %v271_v11  ;;  %v280_v13 = vsel %vm274_vm9, %v271_v11, %v273_v10 }
  0xa8   : > { %v319_v14 = vmul.bf16 %v1482_v17, %v280_v13  ;;  %v320_v15 = vmul.bf16 %v1485_v62, %v275_v12 }
  0xaa   : > { %v426_v23 = vpop.permute.xlu1 %425  ;;  %v424_v24 = vpop.permute.xlu0 %423  ;;  %v708_v29 = vsel %vm702_vm3, %v320_v15, %v681_v22  ;;  %v705_v33 = vsel %vm702_vm3, %v319_v14, %v680_v21 }
  0xab   : > { %v428_v25 = vsel %vm427_vm10, %v426_v23, %v424_v24  ;;  %v433_v26 = vsel %vm427_vm10, %v424_v24, %v426_v23  ;;  %v713_v35 = vsel %vm709_vm5, %v708_v29, %v685_v31  ;;  %v711_v36 = vsel %vm709_vm5, %v705_v33, %v684_v30 }
  0xac   : > { %v472_v27 = vmul.bf16 %v1502_v16, %v433_v26  ;;  %v473_v28 = vmul.bf16 %v1505_v18, %v428_v25 }
  0xae   : > { %v688_v32 = vrot.slane %v472_v27, 2  ;;  %v689_v34 = vrot.slane %v473_v28, 2 }
  0xb0   : > { %v719_v37 = vsel %vm714_vm6, %v713_v35, %v689_v34  ;;  %v716_v38 = vsel %vm714_vm6, %v711_v36, %v688_v32 }
  0xb1   : > { %767 = vmatprep.subr.bf16.mxu0 %v719_v37 }
  0xb2   : > { %768 = vmatpush1.bf16.msra.mxu0 %v716_v38 }
  0xb5   : > { %1112 = vmatmul.mubr.msk.bf16.vlgmr.msra.gmra.mxu0 %vm743_vm11, %v260_v39 }
  0xb7   : > { %v741_v40 = vpop.permute.xlu0 %740 }
 0x175   : > { %v787_v41 = vpop.f32.mrf.mxu0 }
 0x176   : > { %v788_v8 = vadd.f32 %v787_v41, %v741_v40 }
 0x177   : > { %v789_v42 = vpop.f32.mrf.mxu0 }
 0x178   : > { %v794_v7 = vmax.f32 %v788_v8, 0.0  ;;  %v790_v53 = vadd.f32 %v789_v42, %v741_v40 }
 0x179   : > { %v791_v43 = vpop.f32.mrf.mxu0 }
 0x17a   : > { %v1523_v44 = vpack.c.bf16 %v794_v7, %v794_v7  ;;  %v795_v55 = vmax.f32 %v790_v53, 0.0 }
 0x17b   : > { %v792_v47 = vpop.f32.mrf.mxu0 }
 0x17c   : > { %861 = vrot.lane.b32.xlu0 %v1523_v44, %s1236_s14  ;;  %849 = vrot.lane.b32.xlu1 %v1523_v44, %s1237_s15  ;;  %v1537_v57 = vpack.c.bf16 %v795_v55, %v795_v55 }
 0x180   : > { %885 = vrot.lane.b32.xlu0 %v1523_v44, %s1238_s16  ;;  %815 = vrot.lane.b32.xlu1 %v1523_v44, %s1240_s18 }
 0x184   : > { %873 = vrot.lane.b32.xlu0 %v1523_v44, %s1239_s17  ;;  %827 = vrot.lane.b32.xlu1 %v1523_v44, %s1241_s19 }
 0x188   : > { %813 = vrot.lane.b32.xlu0 %v1537_v57, %s1240_s18  ;;  %803 = vrot.lane.b32.xlu1 %v1523_v44, %s1660_s10 }
 0x18c   : > { %825 = vrot.lane.b32.xlu0 %v1537_v57, %s1241_s19  ;;  %851 = vrot.lane.b32.xlu1 %v1537_v57, %s1237_s15  ;;  %s1121_s19 = sshll.u32 %s1303_s25, 7 }
 0x18d   : > { %s1035_s29 = scalar_lea.hbm %s1655_s6, %s1121_s19 }
 0x190   : > { %800 = vrot.lane.b32.xlu0 %v1537_v57, %s1660_s10  ;;  %863 = vrot.lane.b32.xlu1 %v1537_v57, %s1236_s14  ;;  %s1246_s10 = smov [#allocation2]  }
 0x191   : > { %s1177_s18 = sshll.u32 %s1246_s10, 4  ;;  %s1178_s18 = int_to_ptr.vmem [resolvable:$false] %s1177_s18 }
 0x192   : > { %s1179_s25 = scalar_lea.vmem %s1178_s18, 256 }
 0x194   : > { %837 = vrot.lane.b32.xlu0 %v1537_v57, %s1244_s26  ;;  %887 = vrot.lane.b32.xlu1 %v1537_v57, %s1238_s16  ;;  %s242_s16 = sand.u32 1, %s1225_s22  }
 0x195   : > { %s1023_s20 = scalar_lea.sflag [#allocation3], %s242_s16 }
 0x198   : > { %956 = vperm.xlu0 %1172, %v953_v58   ;;  %875 = vrot.lane.b32.xlu1 %v1537_v57, %s1239_s17  ;;  %s1100_s17 = sshll.u32 %s242_s16, 3 }
 0x19c   : > { %839 = vrot.lane.b32.xlu1 %v1523_v44, %s1244_s26  ;;  %s244_s26 = scalar_lea.vmem [#allocation2], %s1100_s17 }
 0x19d   : > { %s1037_s12 = sshll.u32 %s244_s26, 4  ;;  %s1038_s12 = int_to_ptr.vmem [resolvable:$true] %s1037_s12 }
 0x19e   : > { %s1173_s9 = scalar_lea.vmem %s1038_s12, 128  ;;  %p1180_p0 = scmp.lt.s32.totalorder %s1038_s12, %s1178_s18 }
 0x19f   : > { %p1174_p11 = scmp.ne.s32.totalorder %s1038_s12, %s1173_s9  ;;  %p1181_p1 = scmp.lt.s32.totalorder %s1179_s25, %s1173_s9 }
 0x1a1   : > { %p1175_p12 = pnand %p1174_p11, %p1320_p5  ;;  %p1182_p2 = por %p1181_p1, %p1180_p0 }
 0x1a3   : > { %p1176_p13 = pneg %p1175_p12 }
 0x1a5   : > { %p1183_p3 = pnand %p1182_p2, %p1176_p13 }
 0x1ee   : > { %v862_v60 = vpop.permute.xlu0 %861  ;;  %v850_v61 = vpop.permute.xlu1 %849 }
 0x1f2   : > { %v886_v63 = vpop.permute.xlu0 %885  ;;  %v816_v0 = vpop.permute.xlu1 %815 }
 0x1f6   : > { %v874_v3 = vpop.permute.xlu0 %873  ;;  %v828_v4 = vpop.permute.xlu1 %827 }
 0x1fa   : > { %v814_v5 = vpop.permute.xlu0 %813  ;;  %v804_v9 = vpop.permute.xlu1 %803 }
 0x1fb   : > { %v817_v21 = vsel %vm325_vm7, %v816_v0, %v814_v5  ;;  %v821_v22 = vsel %vm325_vm7, %v814_v5, %v816_v0 }
 0x1fc   : > { %v823_v31 = vmul.bf16 %v821_v22, %v1474_v54  ;;  %v824_v32 = vmul.bf16 %v817_v21, %v1477_v56 }
 0x1fe   : > { %v826_v10 = vpop.permute.xlu0 %825  ;;  %v852_v11 = vpop.permute.xlu1 %851  ;;  %v899_v40 = vrot.slane %v823_v31, 6  ;;  %v900_v41 = vrot.slane %v824_v32, 6 }
 0x1ff   : > { %v853_v12 = vsel %vm478_vm2, %v850_v61, %v852_v11  ;;  %v857_v13 = vsel %vm478_vm2, %v852_v11, %v850_v61  ;;  %v829_v34 = vsel %vm376_vm8, %v828_v4, %v826_v10 }
 0x200   : > { %v859_v23 = vmul.bf16 %v853_v12, %v1416_v48  ;;  %v860_v24 = vmul.bf16 %v857_v13, %v1419_v49  ;;  %v836_v42 = vmul.bf16 %v829_v34, %v1491_v2  ;;  %v1009_v13 = vunpack.c.l.bf16 %v1335_v6 }
 0x202   : > { %v864_v14 = vpop.permute.xlu1 %863  ;;  %v801_v15 = vpop.permute.xlu0 %800  ;;  %v911_v35 = vrot.slane %v859_v23, 6  ;;  %v912_v36 = vrot.slane %v860_v24, 6 }
 0x203   : > { %v865_v19 = vsel %vm529_vm0, %v862_v60, %v864_v14  ;;  %v869_v20 = vsel %vm529_vm0, %v864_v14, %v862_v60  ;;  %v805_v25 = vsel %vm274_vm9, %v804_v9, %v801_v15  ;;  %v809_v26 = vsel %vm274_vm9, %v801_v15, %v804_v9 }
 0x204   : > { %v871_v28 = vmul.bf16 %v865_v19, %v1407_v45  ;;  %v872_v29 = vmul.bf16 %v869_v20, %v1410_v46  ;;  %v833_v45 = vsel %vm376_vm8, %v826_v10, %v828_v4  ;;  %v811_v46 = vmul.bf16 %v809_v26, %v1482_v17 }
 0x205   : > { %v812_v37 = vmul.bf16 %v805_v25, %v1485_v62  ;;  %v835_v62 = vmul.bf16 %v833_v45, %v1488_v1  ;;  %v942_v7 = vsel %vm702_vm3, %v1537_v57, %v912_v36  ;;  %v939_v43 = vsel %vm702_vm3, %v1523_v44, %v911_v35 }
 0x206   : > { %v888_v27 = vpop.permute.xlu1 %887  ;;  %v915_v56 = vrot.slane %v871_v28, 4  ;;  %v916_v39 = vrot.slane %v872_v29, 4  ;;  %v838_v47 = vpop.permute.xlu0 %837  ;;  %v904_v4 = vrot.slane %v836_v42, 4  ;;  %v1011_v20 = vcombine.high %v1009_v13, %v1009_v13 }
 0x207   : > { %v889_v33 = vsel %vm631_vm1, %v886_v63, %v888_v27  ;;  %v893_v30 = vsel %vm631_vm1, %v888_v27, %v886_v63  ;;  %v926_v60 = vsel %vm702_vm3, %v812_v37, %v900_v41 }
 0x208   : > { %v896_v48 = vmul.bf16 %v893_v30, %v1422_v50  ;;  %v895_v49 = vmul.bf16 %v889_v33, %v1425_v51  ;;  %v946_v2 = vsel %vm709_vm5, %v942_v7, %v916_v39  ;;  %v944_v61 = vsel %vm709_vm5, %v939_v43, %v915_v56 }
 0x209   : > { %v930_v10 = vsel %vm709_vm5, %v926_v60, %v904_v4 }
 0x20a   : > { %1113 = vmatprep.subr.msk.bf16.mxu1 %vm702_vm3, %v896_v48  ;;  %v876_v38 = vpop.permute.xlu1 %875  ;;  %v963_v54 = vsel %vm702_vm3, %v895_v49, 0 }
 0x20b   : > { %v877_v50 = vsel %vm580_vm4, %v874_v3, %v876_v38  ;;  %v881_v51 = vsel %vm580_vm4, %v876_v38, %v874_v3  ;;  %979 = vmatpush1.bf16.msra.mxu1 %v963_v54  ;;  %v903_v3 = vrot.slane %v835_v62, 4 }
 0x20c   : > { %v883_v8 = vmul.bf16 %v877_v50, %v1428_v52  ;;  %v884_v17 = vmul.bf16 %v881_v51, %v1434_v59  ;;  %v923_v52 = vsel %vm702_vm3, %v811_v46, %v899_v40 }
 0x20d   : > { %v928_v11 = vsel %vm709_vm5, %v923_v52, %v903_v3 }
 0x20e   : > { %v919_v53 = vrot.slane %v883_v8, 2  ;;  %v920_v55 = vrot.slane %v884_v17, 2  ;;  %v840_v58 = vpop.permute.xlu1 %839 }
 0x20f   : > { %v841_v59 = vsel %vm427_vm10, %v840_v58, %v838_v47  ;;  %v845_v1 = vsel %vm427_vm10, %v838_v47, %v840_v58 }
 0x210   : > { %v847_v57 = vmul.bf16 %v845_v1, %v1502_v16  ;;  %v848_v44 = vmul.bf16 %v841_v59, %v1505_v18  ;;  %v951_v63 = vsel %vm714_vm6, %v946_v2, %v920_v55  ;;  %v948_v0 = vsel %vm714_vm6, %v944_v61, %v919_v53  ;;  %v796_v18 = vld [vmem:[%s1651_s2] sm:$0x3] }
 0x211   : > { %980 = vmatprep.subr.bf16.mxu1 %v951_v63 }
 0x212   : > { %v907_v5 = vrot.slane %v847_v57, 2  ;;  %v908_v9 = vrot.slane %v848_v44, 2  ;;  %981 = vmatpush1.bf16.msra.mxu1 %v948_v0 }
 0x213   : > { %v957_v14 = vpop.permute.xlu0 %956 }
 0x214   : > { %v935_v12 = vsel %vm714_vm6, %v930_v10, %v908_v9  ;;  %v932_v16 = vsel %vm714_vm6, %v928_v11, %v907_v5 }
 0x215   : > { %982 = vmatprep.subr.bf16.mxu1 %v935_v12 }
 0x216   : > { %983 = vmatpush1.bf16.msra.mxu1 %v932_v16 }
 0x219   : > { %1114 = vmatmul.mubr.msk.bf16.vlgmr.msra.gmra.mxu1 %vm743_vm11, %v796_v18 }
 0x2d9   : > { %v1002_v15 = vpop.f32.mrf.mxu1 }
 0x2da   : > { %v1003_v19 = vadd.f32 %v1002_v15, %v957_v14 }
 0x2db   : > { %v1004_v21 = vpop.f32.mrf.mxu1 }
 0x2dc   : > { %v1013_v22 = vadd.f32 %v1009_v13, %v1003_v19  ;;  %v1005_v23 = vadd.f32 %v1004_v21, %v957_v14 }
 0x2dd   : > { %v1006_v24 = vpop.f32.mrf.mxu1 }
 0x2de   : > { %v1014_v25 = vadd.f32 %v1011_v20, %v1005_v23  ;;  %v1015_v27 = vmax.f32 %v1013_v22, 0.0 }
 0x2df   : > { %v1007_v26 = vpop.f32.mrf.mxu1 }
 0x2e0   : > { %v1016_v28 = vmax.f32 %v1014_v25, 0.0 }
 0x2e2   : > { %v1019_v29 = vcombine.low %v1015_v27, %v1016_v28 }
 0x2e4   : > { %1021 = vst [vmem:[%s244_s26] sm:$0xff] %v1019_v29 }
 0x2e5   : > { %1186 = shalt.err (!%p1183_p3)
}
 0x2e6   : > { %s1187_s11 = scalar_lea.hbm %s1035_s29, 128  ;;  %s1191_s16 = scalar_lea.hbm %s1655_s6, 256 }
 0x2e7   : > { %p1188_p4 = scmp.ne.s32.totalorder %s1035_s29, %s1187_s11  ;;  %p1192_p9 = scmp.lt.s32.totalorder %s1035_s29, %s1655_s6 }
 0x2e8   : > { %p1193_p10 = scmp.lt.s32.totalorder %s1191_s16, %s1187_s11 }
 0x2e9   : > { %p1189_p7 = pnand %p1188_p4, %p1320_p5 }
 0x2ea   : > { %p1194_p11 = por %p1193_p10, %p1192_p9 }
 0x2eb   : > { %p1190_p8 = pneg %p1189_p7 }
 0x2ed   : > { %p1195_p12 = pnand %p1194_p11, %p1190_p8 }
 0x2ef   : > { %1198 = shalt.err (!%p1195_p12)
}
 0x2f0   : > { %1122 = dma.vmem_to_hbm [thread:$0]  (%p1320_p5), %s1038_s12, 128, %s1035_s29, %s1023_s20  }
 0x2f1 PF: > { %p1128_p13 = scmp.ge.s32.totalorder %s1233_s24, 2  ;;  %s1049_s26 = sand.u32 1, %s1221_s21  }
 0x2f2   : > { %s1050_s13 = scalar_lea.sflag [#allocation3], %s1049_s26 }
 0x2f3   : > { %p1125_p0 = pnand %p1128_p13, %p1324_p6 }
 0x2f5   : > { %p1126_p1 = pneg %p1125_p0 }
 0x2f7   : > { %1216 = dma.done.wait (%p1126_p1), %s1050_s13, 128  }
 0x2f8   : > { %1218 = vsyncadd (%p1126_p1), %s1050_s13, 4294967168  ;;  %p16_p2 = scmp.ge.s32.totalorder %s1307_s27, 4   ;;  %s1661_s21 = smov %s1225_s22 }
 0x2f9   : > { %s1662_s22 = smov %s1229_s23  ;;  %s1663_s23 = smov %s1318_s30 }
 0x2fa   : > { %s1664_s24 = smov %s1307_s27  ;;  %18 = sbr.rel (!%p16_p2) target bundleno = 3 (0x3), region = 79 }
 0x2ff   :  { %1055 = vsyncpa [#allocation3], 1 }
 0x300   :  { %1057 = vsyncpa [#allocation3 + $0x1], 1 }

</bundles_post_ra>
